<compile_context>
chip_gen: v5e
topology: v5e:2x2
jax: 0.10.0
libtpu: 0.0.40
codegen_flags: <defaults>
</compile_context>

<pallas_src>
import jax
import jax.numpy as jnp
from jax import lax
from jax.experimental import pallas as pl
from jax.experimental.pallas import tpu as pltpu


def _round_up(x: int, m: int) -> int:
    return ((x + m - 1) // m) * m


def _sublane_multiple(dtype) -> int:
    # Minimum sublane tiling by element width: f32 -> 8, bf16 -> 16, int8 -> 32.
    itemsize = jnp.dtype(dtype).itemsize
    return {1: 32, 2: 16, 4: 8}.get(itemsize, 8)


def _vmem_capacity_bytes() -> int:
    try:
        return int(pltpu.get_tpu_info().vmem_capacity_bytes)
    except Exception:
        return 64 << 20  # conservative default (v7x per-TC VMEM)


def _pick_tile(total: int, target: int, align: int, min_keep: int) -> int:
    """Tile size for an axis whose alignment-padded extent is `total`.

    (a) the whole axis if it already fits `target` (single block, no tiling);
    (b) else the largest `align`-multiple divisor of `total` (no ragged-edge
        padding) provided it is at least `min_keep`;
    (c) else `target` itself (accept padding the ragged edge).
    """
    if total <= target:
        return total
    best = 0
    c = (target // align) * align
    while c >= align:
        if total % c == 0:
            best = c
            break
        c -= align
    if best >= min_keep:
        return best
    return (target // align) * align


def _linear_kernel(x_ref, w_ref, o_ref, acc_ref):
    # x_ref : (tm, tk) tile of the flattened input.
    # w_ref : (tn, tk) tile of the ORIGINAL [d_out, d_in] weights (no wrapper
    #         transpose); the dot_general below contracts both last axes, so
    #         the "W.T" happens on-chip, hidden under MXU work.
    # o_ref : (tm, tn) output tile.
    # acc_ref: (tm, tn) f32 accumulator, resident across the K grid axis.
    @pl.when(pl.program_id(2) == 0)
    def _init():
        acc_ref[...] = jnp.zeros_like(acc_ref)

    acc_ref[...] += lax.dot_general(
        x_ref[...],
        w_ref[...],
        dimension_numbers=(((1,), (1,)), ((), ())),
        preferred_element_type=jnp.float32,
    )

    @pl.when(pl.program_id(2) == pl.num_programs(2) - 1)
    def _store():
        o_ref[...] = acc_ref[...].astype(o_ref.dtype)


def linear_forward(
    x: jax.Array,
    weights: jax.Array,
    *,
    tm: int | None = None,
    tn: int | None = None,
    tk: int | None = None,
) -> jax.Array:
    """Pallas equivalent of `x @ weights.T` (PyTorch Linear forward, no bias).

    x:       [..., d_in]
    weights: [d_out, d_in]
    returns: [..., d_out]
    """
    d_out, d_in = weights.shape
    lead_shape = x.shape[:-1]
    assert x.shape[-1] == d_in

    m = 1
    for s in lead_shape:
        m *= s
    m_eff = max(m, 1)
    x2 = x.reshape(m, d_in)

    out_dtype = jnp.result_type(x.dtype, weights.dtype)
    xb = jnp.dtype(x.dtype).itemsize
    wb = jnp.dtype(weights.dtype).itemsize
    ob = jnp.dtype(out_dtype).itemsize

    sub = _sublane_multiple(x.dtype)
    m_al = _round_up(m_eff, sub)
    k_al = _round_up(d_in, 128)
    n_al = _round_up(d_out, 128)

    # --- VMEM budget (generation-aware: v5e/v6e 128 MiB, v7x 64 MiB) --------
    capacity = _vmem_capacity_bytes()
    vmem_limit = (capacity * 3) // 4       # scoped-VMEM limit we request
    tile_budget = (vmem_limit * 4) // 5    # double-buffered tiles must fit here

    # --- tile selection ------------------------------------------------------
    if tk is None:
        # Single K block for modest d_in, otherwise large 128-aligned tiles.
        tk = k_al if k_al <= 1024 else _pick_tile(k_al, 512, 128, 256)
    if m_al <= 64:
        # Decode / GEMV regime: W streaming dominates -> tiny tm, very wide
        # lane-dense N slab, big K.
        tm = tm or m_al
        tn = tn or _pick_tile(n_al, 2048, 128, 256)
    else:
        tm = tm or _pick_tile(m_al, 512, sub, 128)
        tn = tn or _pick_tile(n_al, 1024, 128, 256)

    def _footprint(tm_, tk_, tn_):
        return (2 * tm_ * tk_ * xb      # x tile, double-buffered
                + 2 * tn_ * tk_ * wb    # W tile, double-buffered
                + 2 * tm_ * tn_ * ob    # out tile, double-buffered
                + tm_ * tn_ * 4)        # f32 accumulator scratch

    prev = None
    while _footprint(tm, tk, tn) > tile_budget and (tm, tk, tn) != prev:
        prev = (tm, tk, tn)
        if tn >= max(tm, tk) and tn > 256:
            tn = _round_up(tn // 2, 128)
        elif tk >= tm and tk > 256:
            tk = _round_up(tk // 2, 128)
        elif tm > sub:
            tm = _round_up(tm // 2, sub)

    mp = _round_up(m_eff, tm)
    kp = _round_up(d_in, tk)
    np_ = _round_up(d_out, tn)

    # v7x megacore: keep >= 2 parallel (M, N) grid points when the problem is
    # big enough to matter, so both TensorCores get work.
    if (mp // tm) * (np_ // tn) < 2:
        if tn >= 512 and tn % 256 == 0:
            tn //= 2
        elif tm >= 256:
            tm = _round_up(tm // 2, sub)
        mp = _round_up(m_eff, tm)
        np_ = _round_up(d_out, tn)

    # --- pad only genuinely ragged edges (no-op for tile-aligned shapes) ----
    if (mp, kp) != x2.shape:
        x2 = jnp.pad(x2, ((0, mp - m), (0, kp - d_in)))
    w = weights
    if (np_, kp) != w.shape:
        # TODO(synk): if weights persist across calls, hoist this pad out of
        # the per-call path so it is paid once, not per forward.
        w = jnp.pad(w, ((0, np_ - d_out), (0, kp - d_in)))

    grid = (mp // tm, np_ // tn, kp // tk)

    flops = 2 * m_eff * d_in * d_out
    bytes_accessed = (mp * kp * xb * grid[1]      # x streamed once per N tile
                      + np_ * kp * wb * grid[0]   # W streamed once per M tile
                      + mp * np_ * ob)            # output written once

    out = pl.pallas_call(
        _linear_kernel,
        out_shape=jax.ShapeDtypeStruct((mp, np_), out_dtype),
        grid_spec=pltpu.PrefetchScalarGridSpec(
            num_scalar_prefetch=0,
            grid=grid,
            in_specs=[
                pl.BlockSpec((tm, tk), lambda i, j, k: (i, k)),
                pl.BlockSpec((tn, tk), lambda i, j, k: (j, k)),
            ],
            out_specs=pl.BlockSpec((tm, tn), lambda i, j, k: (i, j)),
            scratch_shapes=[pltpu.VMEM((tm, tn), jnp.float32)],
        ),
        compiler_params=pltpu.CompilerParams(
            # M / N tiles are independent -> shard across both TCs on v7x;
            # K is the reduction axis carried in the accumulator.
            dimension_semantics=("parallel", "parallel", "arbitrary"),
            vmem_limit_bytes=int(vmem_limit),
        ),
        cost_estimate=pl.CostEstimate(
            flops=int(flops),
            transcendentals=0,
            bytes_accessed=int(bytes_accessed),
        ),
    )(x2, w)

    out = out[:m, :d_out]
    return out.reshape(*lead_shape, d_out)


if __name__ == "__main__":
    key = jax.random.PRNGKey(0)
    k_x, k_w = jax.random.split(key)

    d_in, d_out = 32, 64
    batch, seq = 2, 8
    x = jax.random.normal(k_x, (batch, seq, d_in), dtype=jnp.float32)
    weights = jax.random.normal(k_w, (d_out, d_in), dtype=jnp.float32)

    out = linear_forward(x, weights)
    out = jax.block_until_ready(out)

    # Reference check against plain JAX matmul (forward semantics of Linear).
    ref = x @ weights.T
    assert out.shape == (batch, seq, d_out)
    assert jnp.allclose(out, ref, atol=1e-3, rtol=1e-3)

    print("KERNEL_OK")
</pallas_src>

<mosaic_0001>
module attributes {stable_mosaic.version = 11 : i64} {
  func.func @_linear_kernel(%arg0: i32, %arg1: i32, %arg2: i32, %arg3: memref<16x128xf32, #tpu.memory_space<vmem>>, %arg4: memref<128x128xf32, #tpu.memory_space<vmem>>, %arg5: memref<16x128xf32, #tpu.memory_space<vmem>>, %arg6: memref<16x128xf32, #tpu.memory_space<vmem>>) attributes {dimension_semantics = [#tpu.dimension_semantics<parallel>, #tpu.dimension_semantics<parallel>, #tpu.dimension_semantics<arbitrary>], iteration_bounds = array<i64: 1, 1, 1>, scalar_prefetch = 0 : i64, scratch_operands = 1 : i64, tpu.core_type = #tpu.core_type<tc>, window_params = [{transform_indices = @transform_0, window_bounds = array<i64: 16, 128>}, {transform_indices = @transform_1, window_bounds = array<i64: 128, 128>}, {transform_indices = @transform_2, window_bounds = array<i64: 16, 128>}]} {
    %c0_i32 = arith.constant 0 : i32
    %0 = arith.cmpi eq, %arg2, %c0_i32 : i32
    %1 = arith.extui %0 : i1 to i32
    %c0_i32_0 = arith.constant 0 : i32
    %2 = arith.cmpi ne, %1, %c0_i32_0 : i32
    scf.if %2 {
      %cst_10 = arith.constant 0.000000e+00 : f32
      %12 = vector.broadcast %cst_10 : f32 to vector<16x128xf32>
      %c0_11 = arith.constant 0 : index
      %c0_12 = arith.constant 0 : index
      %13 = vector.load %arg6[%c0_11, %c0_12] : memref<16x128xf32, #tpu.memory_space<vmem>>, vector<16x128xf32>
      tpu.vector_store %arg6[%c0_11, %c0_12], %12 {strides = array<i32>} : memref<16x128xf32, #tpu.memory_space<vmem>>, vector<16x128xf32>,
    } else {
    }
    %c0 = arith.constant 0 : index
    %c0_1 = arith.constant 0 : index
    %3 = vector.load %arg6[%c0, %c0_1] : memref<16x128xf32, #tpu.memory_space<vmem>>, vector<16x128xf32>
    %c0_2 = arith.constant 0 : index
    %c0_3 = arith.constant 0 : index
    %4 = vector.load %arg3[%c0_2, %c0_3] : memref<16x128xf32, #tpu.memory_space<vmem>>, vector<16x128xf32>
    %c0_4 = arith.constant 0 : index
    %c0_5 = arith.constant 0 : index
    %5 = vector.load %arg4[%c0_4, %c0_5] : memref<128x128xf32, #tpu.memory_space<vmem>>, vector<128x128xf32>
    %cst = arith.constant dense<0.000000e+00> : vector<16x128xf32>
    %6 = tpu.matmul %4, %5, %cst {dimension_numbers = #tpu.dot_dimension_numbers<[1], [1], [0], [0], [0, 0, 1, 0], [], []>} : vector<16x128xf32>, vector<128x128xf32>, vector<16x128xf32> -> vector<16x128xf32>
    %7 = arith.addf %3, %6 : vector<16x128xf32>
    %c0_6 = arith.constant 0 : index
    %c0_7 = arith.constant 0 : index
    %8 = vector.load %arg6[%c0_6, %c0_7] : memref<16x128xf32, #tpu.memory_space<vmem>>, vector<16x128xf32>
    tpu.vector_store %arg6[%c0_6, %c0_7], %7 {strides = array<i32>} : memref<16x128xf32, #tpu.memory_space<vmem>>, vector<16x128xf32>,
    %c0_i32_8 = arith.constant 0 : i32
    %9 = arith.cmpi eq, %arg2, %c0_i32_8 : i32
    %10 = arith.extui %9 : i1 to i32
    %c0_i32_9 = arith.constant 0 : i32
    %11 = arith.cmpi ne, %10, %c0_i32_9 : i32
    scf.if %11 {
      %c0_10 = arith.constant 0 : index
      %c0_11 = arith.constant 0 : index
      %12 = vector.load %arg6[%c0_10, %c0_11] : memref<16x128xf32, #tpu.memory_space<vmem>>, vector<16x128xf32>
      %c0_12 = arith.constant 0 : index
      %c0_13 = arith.constant 0 : index
      %13 = vector.load %arg5[%c0_12, %c0_13] : memref<16x128xf32, #tpu.memory_space<vmem>>, vector<16x128xf32>
      tpu.vector_store %arg5[%c0_12, %c0_13], %12 {strides = array<i32>} : memref<16x128xf32, #tpu.memory_space<vmem>>, vector<16x128xf32>,
    } else {
    }
    return
  }
  func.func @transform_0(%arg0: i32, %arg1: i32, %arg2: i32) -> (i32, i32) {
    %c0_i32 = arith.constant 0 : i32
    return %arg0, %arg2 : i32, i32
  }
  func.func @transform_1(%arg0: i32, %arg1: i32, %arg2: i32) -> (i32, i32) {
    %c0_i32 = arith.constant 0 : i32
    return %arg1, %arg2 : i32, i32
  }
  func.func @transform_2(%arg0: i32, %arg1: i32, %arg2: i32) -> (i32, i32) {
    %c0_i32 = arith.constant 0 : i32
    return %arg0, %arg1 : i32, i32
  }
}

</mosaic_0001>

<bundles_post_ra>
// kernel: tpu_custom_call.1
= control target key start
LH: loop header
LB: loop body
LE: loop exit
PB: predicated region body
PF: predicated region fallthrough
CT: control target
= control target key end

     0   :  { %7 = vsyncpa [#allocation4], 0  ;;  %s261_s0 = inlined_call_operand.hbm [shape: f32[16,128], index: 0, kind: input, shape index: {}]   ;;  %s262_s1 = inlined_call_operand.hbm [shape: f32[128,128], index: 1, kind: input, shape index: {}]   ;;  %s263_s2 = inlined_call_operand.hbm [shape: f32[16,128], index: 2, kind: output, shape index: {}]  }
   0x1   :  { %8 = vsyncpa [#allocation7], 0 }
   0x2   :  { %9 = vsyncpa [#allocation5], 0  ;;  %s14_s11 = sshll.u32 %s261_s0, 4  ;;  %s223_s12 = smov [#allocation3]   ;;  %s15_s11 = int_to_ptr.hbm [resolvable:$true] %s14_s11 }
   0x3   :  { %s16_s13 = sshll.u32 %s223_s12, 4  ;;  %s27_s16 = sshll.u32 %s262_s1, 4  ;;  %s17_s13 = int_to_ptr.vmem [resolvable:$true] %s16_s13  ;;  %s28_s16 = int_to_ptr.hbm [resolvable:$true] %s27_s16 }
   0x4   :  { %s224_s17 = smov 128   ;;  %s225_s18 = smov 8  }
   0x5   :  { %22 = dma.hbm_to_vmem [thread:$0]  %s15_s11, 256, %s17_s13, [#allocation4], %s224_s17, %s224_s17, %s225_s18  }
   0x6   :  { %s226_s19 = smov [#allocation6]  }
   0x7   :  { %s29_s20 = sshll.u32 %s226_s19, 4  ;;  %s30_s20 = int_to_ptr.vmem [resolvable:$true] %s29_s20 }
   0x8   :  { %35 = dma.hbm_to_vmem [thread:$0]  %s28_s16, 2048, %s30_s20, [#allocation7], %s224_s17, %s224_s17, %s225_s18  }
   0x9   :  { %217 = dma.done.wait [#allocation4], 256  }
   0xa   :  { %218 = vsyncadd [#allocation4], 4294967040 }
   0xb   :  { %219 = dma.done.wait [#allocation7], 2048  }
   0xc   :  { %220 = vsyncadd [#allocation7], 4294965248  ;;  %v69_v0 = vld [vmem:[#allocation6 + $0x78] sm:$0xff]  ;;  %v68_v1 = vld [vmem:[#allocation6 + $0x70] sm:$0xff]  ;;  %s227_s0 = smov [#allocation8]   ;;  %s110_s23 = sshll.u32 %s263_s2, 4  ;;  %s111_s23 = int_to_ptr.hbm [resolvable:$true] %s110_s23 }
   0xd   :  { %70 = vmatpush.xpose.msra.mxu0 %v69_v0  ;;  %124 = vmatpush.xpose.msra.mxu1 %v69_v0  ;;  %v67_v2 = vld [vmem:[#allocation6 + $0x68] sm:$0xff]  ;;  %v66_v3 = vld [vmem:[#allocation6 + $0x60] sm:$0xff]  ;;  %v65_v4 = vld [vmem:[#allocation6 + $0x58] sm:$0xff]  ;;  %s108_s1 = sshll.u32 %s227_s0, 4  ;;  %s109_s1 = int_to_ptr.vmem [resolvable:$true] %s108_s1 }
   0xe   :  { %v64_v5 = vld [vmem:[#allocation6 + $0x50] sm:$0xff]  ;;  %v63_v6 = vld [vmem:[#allocation6 + $0x48] sm:$0xff]  ;;  %v62_v7 = vld [vmem:[#allocation6 + $0x40] sm:$0xff] }
   0xf   :  { %v61_v8 = vld [vmem:[#allocation6 + $0x38] sm:$0xff]  ;;  %v60_v9 = vld [vmem:[#allocation6 + $0x30] sm:$0xff]  ;;  %v59_v10 = vld [vmem:[#allocation6 + $0x28] sm:$0xff] }
  0x10   :  { %v58_v11 = vld [vmem:[#allocation6 + $0x20] sm:$0xff]  ;;  %v57_v12 = vld [vmem:[#allocation6 + $0x18] sm:$0xff]  ;;  %v56_v13 = vld [vmem:[#allocation6 + $0x10] sm:$0xff] }
  0x11   :  { %71 = vmatpush.xpose.msra.mxu0 %v68_v1  ;;  %125 = vmatpush.xpose.msra.mxu1 %v68_v1  ;;  %v55_v14 = vld [vmem:[#allocation6 + $0x8] sm:$0xff]  ;;  %v54_v15 = vld [vmem:[#allocation6] sm:$0xff]  ;;  %v52_v16 = vld [vmem:[#allocation3] sm:$0xff] }
  0x12   :  { %v53_v17 = vld [vmem:[#allocation3 + $0x8] sm:$0xff] }
  0x15   :  { %72 = vmatpush.xpose.msra.mxu0 %v67_v2  ;;  %126 = vmatpush.xpose.msra.mxu1 %v67_v2 }
  0x19   :  { %73 = vmatpush.xpose.msra.mxu0 %v66_v3  ;;  %127 = vmatpush.xpose.msra.mxu1 %v66_v3 }
  0x1d   :  { %74 = vmatpush.xpose.msra.mxu0 %v65_v4  ;;  %128 = vmatpush.xpose.msra.mxu1 %v65_v4 }
  0x21   :  { %75 = vmatpush.xpose.msra.mxu0 %v64_v5  ;;  %129 = vmatpush.xpose.msra.mxu1 %v64_v5 }
  0x25   :  { %76 = vmatpush.xpose.msra.mxu0 %v63_v6  ;;  %130 = vmatpush.xpose.msra.mxu1 %v63_v6 }
  0x29   :  { %77 = vmatpush.xpose.msra.mxu0 %v62_v7  ;;  %131 = vmatpush.xpose.msra.mxu1 %v62_v7 }
  0x2d   :  { %78 = vmatpush.xpose.msra.mxu0 %v61_v8  ;;  %132 = vmatpush.xpose.msra.mxu1 %v61_v8 }
  0x31   :  { %79 = vmatpush.xpose.msra.mxu0 %v60_v9  ;;  %133 = vmatpush.xpose.msra.mxu1 %v60_v9 }
  0x35   :  { %80 = vmatpush.xpose.msra.mxu0 %v59_v10  ;;  %134 = vmatpush.xpose.msra.mxu1 %v59_v10 }
  0x39   :  { %81 = vmatpush.xpose.msra.mxu0 %v58_v11  ;;  %135 = vmatpush.xpose.msra.mxu1 %v58_v11 }
  0x3d   :  { %82 = vmatpush.xpose.msra.mxu0 %v57_v12  ;;  %136 = vmatpush.xpose.msra.mxu1 %v57_v12 }
  0x41   :  { %83 = vmatpush.xpose.msra.mxu0 %v56_v13  ;;  %137 = vmatpush.xpose.msra.mxu1 %v56_v13 }
  0x45   :  { %84 = vmatpush.xpose.msra.mxu0 %v55_v14  ;;  %138 = vmatpush.xpose.msra.mxu1 %v55_v14 }
  0x49   :  { %85 = vmatpush.xpose.msra.mxu0 %v54_v15  ;;  %139 = vmatpush.xpose.msra.mxu1 %v54_v15 }
  0x4c   :  { %86 = vmatmul.f32.vlgmr.msra.gmra.mxu0 %v52_v16  ;;  %89 = vmatmul.f32.vlgmr.msra.gmra.mxu1 %v53_v17 }
  0xc9   :  { %v87_v18 = vpop.f32.mrf.mxu0  ;;  %v90_v19 = vpop.f32.mrf.mxu1 }
  0xca   :  { %102 = vst [vmem:[#allocation8] sm:$0xff] %v87_v18 }
  0xcb   :  { %103 = vst [vmem:[#allocation8 + $0x8] sm:$0xff] %v90_v19 }
  0xcc   :  { %116 = dma.vmem_to_hbm [thread:$0]  %s109_s1, 256, %s111_s23, [#allocation5], %s224_s17, %s224_s17, %s225_s18  }
  0xcd   :  { %221 = dma.done.wait [#allocation5], 256  }
  0xce   :  { %222 = vsyncadd [#allocation5], 4294967040 }
  0xcf   :  { %121 = vsyncpa [#allocation4], 1 }
  0xd0   :  { %122 = vsyncpa [#allocation7], 1 }
  0xd1   :  { %123 = vsyncpa [#allocation5], 1 }

</bundles_post_ra>
